<compile_context>
chip_gen: v7x
topology: tpu7x:2x2x1
jax: 0.10.0
libtpu: 0.0.40
codegen_flags: <defaults>
</compile_context>

<pallas_src>
import math

import jax
import jax.numpy as jnp
from jax.experimental import pallas as pl
from jax.experimental.pallas import tpu as pltpu


def _cdiv(a, b):
    return -(-a // b)


def _round_up(a, b):
    return _cdiv(a, b) * b


def _two_tensorcores():
    """Best-effort: does this chip expose 2 TensorCores (megacore) to one kernel?"""
    try:
        kind = jax.devices()[0].device_kind.lower()
    except Exception:
        return False
    if "lite" in kind or "v5e" in kind or "v6e" in kind:
        return False  # v5e / v6e: single TensorCore per chip
    return any(tag in kind for tag in ("v7", "v5p", "v4", "v5"))


# ----------------------------- Pallas kernel ------------------------------

def _h_swish_kernel(x_ref, o_ref):
    x = x_ref[...]
    # h_swish(x) = x * relu6(x + 3) / 6 — a handful of VPU ops, fully hidden
    # under the HBM<->VMEM DMA; no extra pipelining or EUP tricks needed.
    o_ref[...] = (x * (jnp.clip(x + 3.0, 0.0, 6.0) * (1.0 / 6.0))).astype(o_ref.dtype)


# ------------------------------- wrapper -----------------------------------

_TILE_CAP_BYTES = 2 * 1024 * 1024   # ~2 MiB per block ~= 85% of HBM roofline


def h_swish(x):
    orig_shape = x.shape
    orig_dtype = x.dtype
    T = int(math.prod(orig_shape)) if orig_shape else 1

    if T == 0:                      # zero-sized tensor: nothing to do
        return x

    flat = x.reshape(-1)
    itemsize = jnp.dtype(orig_dtype).itemsize
    sub = max(8, 32 // itemsize)    # packed sublane tile: 8 f32 / 16 bf16 / 32 i8

    # ---- lay the tensor out as a lane-dense 2-D slab (no pad when possible) --
    pad_tail = 0
    if T % 128 == 0:
        cols = 128
        for c in (2048, 1024, 512, 256):
            if T % c == 0:
                cols = c
                break
        rows = T // cols
    else:
        # Rare fallback for irregular element counts: pad only to a multiple of
        # 8*128 (<= 4 KiB of waste).  Costs one extra pad + slice pass, but the
        # common NCHW activation path above never takes it.
        cols = 128
        padded = _round_up(T, sub * cols)
        pad_tail = padded - T
        flat = jnp.pad(flat, (0, pad_tail))
        rows = padded // cols
    slab = flat.reshape(rows, cols)

    # ---- generation-aware grid / tile sizing ----
    two_tc = _two_tensorcores()
    row_bytes = cols * itemsize
    bm_cap = max(sub, (_TILE_CAP_BYTES // row_bytes) // sub * sub)

    if rows <= bm_cap and not (two_tc and rows >= 2 * sub):
        # Small slab on a 1-TC chip (or too few rows to split): one full block
        # (block == full array dims, so any row count is a legal layout).
        bm = rows
    else:
        bm = bm_cap
        if two_tc:
            # Prefer an even number of grid steps so both TensorCores get the
            # same amount of work (avoids a 1.5x tail on small odd grids).
            steps = _cdiv(rows, bm)
            if steps == 1 or steps % 2 == 1:
                steps = max(2, steps + (steps % 2))
                bm = max(sub, min(bm_cap, _round_up(_cdiv(rows, steps), sub)))
    grid = (_cdiv(rows, bm),)

    out = pl.pallas_call(
        _h_swish_kernel,
        out_shape=jax.ShapeDtypeStruct((rows, cols), orig_dtype),
        grid=grid,
        in_specs=[pl.BlockSpec((bm, cols), lambda i: (i, 0))],
        out_specs=pl.BlockSpec((bm, cols), lambda i: (i, 0)),
        compiler_params=pltpu.CompilerParams(
            dimension_semantics=("parallel",),
            # in + out, double-buffered <=2 MiB tiles => <= ~8 MiB live VMEM;
            # comfortably inside every generation's budget (incl. v7x 64 MiB).
            vmem_limit_bytes=32 * 1024 * 1024,
        ),
    )(slab)

    if pad_tail:
        return out.reshape(-1)[:T].reshape(orig_shape)
    return out.reshape(orig_shape)


# --------------------------------- main -------------------------------------

if __name__ == "__main__":
    key = jax.random.PRNGKey(0)
    # Small NCHW-like input, consistent with how h_swish is used inside FBSNet.
    x = jax.random.normal(key, (2, 4, 16, 16), jnp.float32)

    fwd = jax.jit(h_swish)
    out = jax.block_until_ready(fwd(x))

    ref = x * jnp.clip(x + 3.0, 0.0, 6.0) / 6.0
    assert out.shape == x.shape, out.shape
    assert out.dtype == x.dtype, out.dtype
    assert bool(jnp.all(jnp.isfinite(out)))
    assert bool(jnp.allclose(out, ref, atol=1e-6, rtol=1e-6))
    print("KERNEL_OK")
</pallas_src>

<mosaic_0001>
module attributes {stable_mosaic.version = 11 : i64} {
  func.func @_h_swish_kernel(%arg0: i32, %arg1: memref<1x2048xf32, #tpu.memory_space<vmem>>, %arg2: memref<1x2048xf32, #tpu.memory_space<vmem>>) attributes {dimension_semantics = [#tpu.dimension_semantics<parallel>], iteration_bounds = array<i64: 1>, scalar_prefetch = 0 : i64, scratch_operands = 0 : i64, tpu.core_type = #tpu.core_type<tc>, window_params = [{transform_indices = @transform_0, window_bounds = array<i64: 1, 2048>}, {transform_indices = @transform_1, window_bounds = array<i64: 1, 2048>}]} {
    %c0 = arith.constant 0 : index
    %c0_0 = arith.constant 0 : index
    %0 = vector.load %arg1[%c0, %c0_0] : memref<1x2048xf32, #tpu.memory_space<vmem>>, vector<1x2048xf32>
    %cst = arith.constant 3.000000e+00 : f32
    %1 = vector.broadcast %cst : f32 to vector<1x2048xf32>
    %2 = arith.addf %0, %1 : vector<1x2048xf32>
    %cst_1 = arith.constant 0.000000e+00 : f32
    %cst_2 = arith.constant 6.000000e+00 : f32
    %3 = vector.broadcast %cst_1 : f32 to vector<1x2048xf32>
    %4 = arith.maximumf %3, %2 : vector<1x2048xf32>
    %5 = vector.broadcast %cst_2 : f32 to vector<1x2048xf32>
    %6 = arith.minimumf %5, %4 : vector<1x2048xf32>
    %cst_3 = arith.constant 0.166666672 : f32
    %7 = vector.broadcast %cst_3 : f32 to vector<1x2048xf32>
    %8 = arith.mulf %6, %7 : vector<1x2048xf32>
    %9 = arith.mulf %0, %8 : vector<1x2048xf32>
    %c0_4 = arith.constant 0 : index
    %c0_5 = arith.constant 0 : index
    %10 = vector.load %arg2[%c0_4, %c0_5] : memref<1x2048xf32, #tpu.memory_space<vmem>>, vector<1x2048xf32>
    tpu.vector_store %arg2[%c0_4, %c0_5], %9 {strides = array<i32>} : memref<1x2048xf32, #tpu.memory_space<vmem>>, vector<1x2048xf32>,
    return
  }
  func.func @transform_0(%arg0: i32) -> (i32, i32) {
    %c0_i32 = arith.constant 0 : i32
    %c0_i32_0 = arith.constant 0 : i32
    return %arg0, %c0_i32 : i32, i32
  }
  func.func @transform_1(%arg0: i32) -> (i32, i32) {
    %c0_i32 = arith.constant 0 : i32
    %c0_i32_0 = arith.constant 0 : i32
    return %arg0, %c0_i32 : i32, i32
  }
}

</mosaic_0001>

<bundles_post_ra>
// kernel: h_swish.1
= control target key start
LH: loop header
LB: loop body
LE: loop exit
PB: predicated region body
PF: predicated region fallthrough
CT: control target
= control target key end

     0   :  { %s48_s0 = inlined_call_operand.vmem [shape: f32[1,2048], index: 0, kind: input, shape index: {}]   ;;  %s49_s1 = inlined_call_operand.vmem [shape: f32[1,2048], index: 1, kind: output, shape index: {}]  }
   0x1   :  { %v8_v0 = vld [vmem:[%s48_s0] sm:$0xff]  ;;  %v9_v1 = vld [vmem:[%s48_s0 + $0x8] sm:$0xff] }
   0x2   :  { %v10_v2 = vadd.f32 3.0, %v8_v0  ;;  %v11_v3 = vadd.f32 3.0, %v9_v1 }
   0x4   :  { %v12_v4 = vmax.f32 %v10_v2, 0.0  ;;  %v13_v5 = vmax.f32 %v11_v3, 0.0 }
   0x6   :  { %v14_v6 = vmin.f32 %v12_v4, 6.0  ;;  %v15_v7 = vmin.f32 %v13_v5, 6.0 }
   0x8   :  { %v16_v8 = vmul.f32 0.16666667, %v14_v6  ;;  %v17_v9 = vmul.f32 0.16666667, %v15_v7 }
   0xa   :  { %v18_v10 = vmul.f32 %v16_v8, %v8_v0  ;;  %v19_v11 = vmul.f32 %v17_v9, %v9_v1 }
   0xc   :  { %20 = vst [vmem:[%s49_s1] sm:$0xff] %v18_v10  ;;  %21 = vst [vmem:[%s49_s1 + $0x8] sm:$0xff] %v19_v11 }

</bundles_post_ra>
